<compile_context>
chip_gen: v7x
topology: tpu7x:2x2x1
jax: 0.10.0
libtpu: 0.0.40
codegen_flags: <defaults>
</compile_context>

<pallas_src>
import functools

import jax
import jax.numpy as jnp
from jax.experimental import pallas as pl
from jax.experimental.pallas import tpu as pltpu


# ------------------------- fused Pallas kernel -------------------------

def local_attention_kernel(mask_ref, x_ref, w_ref, o_ref, *, H, W, kH, kW, Cout):
    """One image per grid step.

    mask_ref: (kH*kW, P) f32 zero-pad validity masks (1 inside image, 0 OOB)
    x_ref:    (1, Cin, P)  input image, P = H*W flattened spatial (lane axis)
    w_ref:    (3*Cout, Cin) stacked 1x1-conv weights [w_theta; w_phi; w_value]
    o_ref:    (1, Cout, P) output
    """
    P = x_ref.shape[2]
    rh, rw = kH // 2, kW // 2
    ntap = kH * kW
    tap_off = [(di - rh) * W + (dj - rw) for di in range(kH) for dj in range(kW)]

    def shift(v, off):
        # y[:, p] = v[:, p + off]; wrapped lanes are killed by the tap mask.
        if off == 0:
            return v
        return pltpu.roll(v, shift=(-off) % P, axis=1)        # XLU lane rotation

    xn = x_ref[0]                                             # (Cin, P)

    # All three 1x1 convs in one MXU matmul: (3*Cout, Cin) @ (Cin, P), f32 acc.
    qkv = jnp.dot(w_ref[...], xn, preferred_element_type=jnp.float32)
    x1 = qkv[0 * Cout:1 * Cout]                               # theta (Cout, P)
    x2 = qkv[1 * Cout:2 * Cout]                               # phi
    x3 = qkv[2 * Cout:3 * Cout]                               # value

    # Pass 1 -- f_similar: per-position dot of x1 against each shifted x2.
    # Mask applied at (1,P) AFTER the channel reduce (OOB logits exactly 0,
    # matching PyTorch's zero-padded unfold).
    sims = []
    for t in range(ntap):
        s = jnp.sum(x1 * shift(x2, tap_off[t]), axis=0, keepdims=True)  # (1, P)
        sims.append(s * mask_ref[t:t + 1, :])

    # Softmax over the kH*kW taps (elementwise on (1, P) rows).
    mx = sims[0]
    for t in range(1, ntap):
        mx = jnp.maximum(mx, sims[t])
    exps = [jnp.exp(s - mx) for s in sims]
    den = exps[0]
    for t in range(1, ntap):
        den = den + exps[t]
    inv = pl.reciprocal(den, approx=True)                     # EUP slot, ~free

    # Pass 2 -- f_weighting: recompute the x3 rolls (no taps kept live) and
    # fold the zero-pad mask into the per-tap softmax weight.
    wgt = (exps[0] * inv) * mask_ref[0:1, :]                  # (1, P)
    out = shift(x3, tap_off[0]) * wgt
    for t in range(1, ntap):
        wgt = (exps[t] * inv) * mask_ref[t:t + 1, :]
        out = out + shift(x3, tap_off[t]) * wgt
    o_ref[0] = out.astype(o_ref.dtype)                        # lane-dense store


# ------------------------- wrapper -------------------------

@functools.partial(jax.jit, static_argnames=("kH", "kW"))
def torch_local_attention(x, w1, w2, w3, *, kH, kW):
    """x: (N, Cin, H, W) NCHW;  wK: (Cout, Cin) (= torch conv weight squeezed)."""
    N, Cin, H, W = x.shape
    Cout = w1.shape[0]
    P = H * W
    rh, rw = kH // 2, kW // 2
    ntap = kH * kW

    # Precompute the (kH*kW, P) zero-pad boundary masks once (tiny; avoids
    # rebuilding iota/compare chains inside every grid step).
    ii = jnp.arange(P, dtype=jnp.int32) // W
    jj = jnp.arange(P, dtype=jnp.int32) % W
    rows = []
    for di in range(kH):
        for dj in range(kW):
            oi, oj = di - rh, dj - rw
            rows.append((ii + oi >= 0) & (ii + oi < H) &
                        (jj + oj >= 0) & (jj + oj < W))
    tap_mask = jnp.stack(rows, axis=0).astype(jnp.float32)    # (ntap, P)

    xf = x.reshape(N, Cin, P)                                 # free reshape, native dtype
    w_all = jnp.concatenate([w1, w2, w3], axis=0).astype(x.dtype)

    kern = functools.partial(local_attention_kernel,
                             H=H, W=W, kH=kH, kW=kW, Cout=Cout)
    out = pl.pallas_call(
        kern,
        out_shape=jax.ShapeDtypeStruct((N, Cout, P), x.dtype),
        grid=(N,),                                            # one image per step
        in_specs=[
            pl.BlockSpec((ntap, P), lambda n: (0, 0)),        # masks (shared)
            pl.BlockSpec((1, Cin, P), lambda n: (n, 0, 0)),   # this image
            pl.BlockSpec((3 * Cout, Cin), lambda n: (0, 0)),  # stacked weights
        ],
        out_specs=pl.BlockSpec((1, Cout, P), lambda n: (n, 0, 0)),
        compiler_params=pltpu.CompilerParams(
            dimension_semantics=("parallel",)),               # megacore on v7x
    )(tap_mask, xf, w_all)
    return out.reshape(N, Cout, H, W)                         # free reshape


# ------------------------- pure-JAX reference (PyTorch semantics) -------------------------

def reference_local_attention(x, w1, w2, w3, kH, kW):
    N, Cin, H, W = x.shape
    rh, rw = kH // 2, kW // 2
    hp = jax.lax.Precision.HIGHEST
    x1 = jnp.einsum("oc,nchw->nohw", w1, x, precision=hp)
    x2 = jnp.einsum("oc,nchw->nohw", w2, x, precision=hp)
    x3 = jnp.einsum("oc,nchw->nohw", w3, x, precision=hp)
    x2p = jnp.pad(x2, ((0, 0), (0, 0), (rh, rh), (rw, rw)))
    x3p = jnp.pad(x3, ((0, 0), (0, 0), (rh, rh), (rw, rw)))
    sims, taps = [], []
    for di in range(kH):
        for dj in range(kW):
            s2 = x2p[:, :, di:di + H, dj:dj + W]
            s3 = x3p[:, :, di:di + H, dj:dj + W]
            sims.append(jnp.sum(x1 * s2, axis=1))             # (N, H, W)
            taps.append(s3)
    sim = jnp.stack(sims, axis=-1)                            # (N, H, W, kH*kW)
    wgt = jax.nn.softmax(sim, axis=-1)
    out = jnp.zeros_like(x3)
    for t in range(kH * kW):
        out = out + taps[t] * wgt[..., t][:, None, :, :]
    return out


# ------------------------- main -------------------------

if __name__ == "__main__":
    N, Cin, Cout, H, W = 2, 4, 8, 16, 16
    kH = kW = 3

    key = jax.random.PRNGKey(0)
    kx, k1, k2, k3 = jax.random.split(key, 4)
    x = jax.random.normal(kx, (N, Cin, H, W), jnp.float32)
    w1 = 0.25 * jax.random.normal(k1, (Cout, Cin), jnp.float32)
    w2 = 0.25 * jax.random.normal(k2, (Cout, Cin), jnp.float32)
    w3 = 0.25 * jax.random.normal(k3, (Cout, Cin), jnp.float32)

    y = torch_local_attention(x, w1, w2, w3, kH=kH, kW=kW)
    jax.block_until_ready(y)
    assert y.shape == (N, Cout, H, W), y.shape

    y_ref = reference_local_attention(x, w1, w2, w3, kH, kW)
    err = float(jnp.max(jnp.abs(y - y_ref)))
    assert err < 5e-2, f"max abs error vs reference: {err}"
    print("KERNEL_OK")
</pallas_src>

<mosaic_0001>
module attributes {stable_mosaic.version = 11 : i64} {
  func.func @local_attention_kernel(%arg0: i32, %arg1: memref<9x256xf32, #tpu.memory_space<vmem>>, %arg2: memref<1x4x256xf32, #tpu.memory_space<vmem>>, %arg3: memref<24x4xf32, #tpu.memory_space<vmem>>, %arg4: memref<1x8x256xf32, #tpu.memory_space<vmem>>) attributes {dimension_semantics = [#tpu.dimension_semantics<parallel>], iteration_bounds = array<i64: 2>, scalar_prefetch = 0 : i64, scratch_operands = 0 : i64, tpu.core_type = #tpu.core_type<tc>, window_params = [{pipeline_mode = #tpu.pipeline_mode<synchronous>, transform_indices = @transform_0, window_bounds = array<i64: 9, 256>}, {transform_indices = @transform_1, window_bounds = array<i64: 1, 4, 256>}, {pipeline_mode = #tpu.pipeline_mode<synchronous>, transform_indices = @transform_2, window_bounds = array<i64: 24, 4>}, {transform_indices = @transform_3, window_bounds = array<i64: 1, 8, 256>}]} {
    %c0 = arith.constant 0 : index
    %c0_0 = arith.constant 0 : index
    %c0_1 = arith.constant 0 : index
    %0 = vector.load %arg2[%c0, %c0_0, %c0_1] : memref<1x4x256xf32, #tpu.memory_space<vmem>>, vector<1x4x256xf32>
    %1 = vector.shape_cast %0 : vector<1x4x256xf32> to vector<4x256xf32>
    %c0_2 = arith.constant 0 : index
    %c0_3 = arith.constant 0 : index
    %2 = vector.load %arg3[%c0_2, %c0_3] : memref<24x4xf32, #tpu.memory_space<vmem>>, vector<24x4xf32>
    %cst = arith.constant dense<0.000000e+00> : vector<24x256xf32>
    %3 = tpu.matmul %2, %1, %cst {dimension_numbers = #tpu.dot_dimension_numbers<[1], [0], [0], [1], [0, 0, 1, 1], [], []>} : vector<24x4xf32>, vector<4x256xf32>, vector<24x256xf32> -> vector<24x256xf32>
    %4 = vector.extract_strided_slice %3 {offsets = [0, 0], sizes = [8, 256], strides = [1, 1]} : vector<24x256xf32> to vector<8x256xf32>
    %5 = vector.extract_strided_slice %3 {offsets = [8, 0], sizes = [8, 256], strides = [1, 1]} : vector<24x256xf32> to vector<8x256xf32>
    %6 = vector.extract_strided_slice %3 {offsets = [16, 0], sizes = [8, 256], strides = [1, 1]} : vector<24x256xf32> to vector<8x256xf32>
    %c17_i32 = arith.constant 17 : i32
    %7 = tpu.dynamic_rotate %5 by %c17_i32 dim 1 : vector<8x256xf32>, i32 -> vector<8x256xf32>
    %8 = arith.mulf %4, %7 : vector<8x256xf32>
    %cst_4 = arith.constant dense<0.000000e+00> : vector<256xf32>
    %9 = vector.multi_reduction <add>, %8, %cst_4 [0] : vector<8x256xf32> to vector<256xf32>
    %10 = vector.shape_cast %9 : vector<256xf32> to vector<1x256xf32>
    %c0_5 = arith.constant 0 : index
    %c0_6 = arith.constant 0 : index
    %11 = vector.load %arg1[%c0_5, %c0_6] : memref<9x256xf32, #tpu.memory_space<vmem>>, vector<1x256xf32>
    %12 = arith.mulf %10, %11 : vector<1x256xf32>
    %c16_i32 = arith.constant 16 : i32
    %13 = tpu.dynamic_rotate %5 by %c16_i32 dim 1 : vector<8x256xf32>, i32 -> vector<8x256xf32>
    %14 = arith.mulf %4, %13 : vector<8x256xf32>
    %cst_7 = arith.constant dense<0.000000e+00> : vector<256xf32>
    %15 = vector.multi_reduction <add>, %14, %cst_7 [0] : vector<8x256xf32> to vector<256xf32>
    %16 = vector.shape_cast %15 : vector<256xf32> to vector<1x256xf32>
    %c1 = arith.constant 1 : index
    %c0_8 = arith.constant 0 : index
    %17 = vector.load %arg1[%c1, %c0_8] : memref<9x256xf32, #tpu.memory_space<vmem>>, vector<1x256xf32>
    %18 = arith.mulf %16, %17 : vector<1x256xf32>
    %c15_i32 = arith.constant 15 : i32
    %19 = tpu.dynamic_rotate %5 by %c15_i32 dim 1 : vector<8x256xf32>, i32 -> vector<8x256xf32>
    %20 = arith.mulf %4, %19 : vector<8x256xf32>
    %cst_9 = arith.constant dense<0.000000e+00> : vector<256xf32>
    %21 = vector.multi_reduction <add>, %20, %cst_9 [0] : vector<8x256xf32> to vector<256xf32>
    %22 = vector.shape_cast %21 : vector<256xf32> to vector<1x256xf32>
    %c2 = arith.constant 2 : index
    %c0_10 = arith.constant 0 : index
    %23 = vector.load %arg1[%c2, %c0_10] : memref<9x256xf32, #tpu.memory_space<vmem>>, vector<1x256xf32>
    %24 = arith.mulf %22, %23 : vector<1x256xf32>
    %c1_i32 = arith.constant 1 : i32
    %25 = tpu.dynamic_rotate %5 by %c1_i32 dim 1 : vector<8x256xf32>, i32 -> vector<8x256xf32>
    %26 = arith.mulf %4, %25 : vector<8x256xf32>
    %cst_11 = arith.constant dense<0.000000e+00> : vector<256xf32>
    %27 = vector.multi_reduction <add>, %26, %cst_11 [0] : vector<8x256xf32> to vector<256xf32>
    %28 = vector.shape_cast %27 : vector<256xf32> to vector<1x256xf32>
    %c3 = arith.constant 3 : index
    %c0_12 = arith.constant 0 : index
    %29 = vector.load %arg1[%c3, %c0_12] : memref<9x256xf32, #tpu.memory_space<vmem>>, vector<1x256xf32>
    %30 = arith.mulf %28, %29 : vector<1x256xf32>
    %31 = arith.mulf %4, %5 : vector<8x256xf32>
    %cst_13 = arith.constant dense<0.000000e+00> : vector<256xf32>
    %32 = vector.multi_reduction <add>, %31, %cst_13 [0] : vector<8x256xf32> to vector<256xf32>
    %33 = vector.shape_cast %32 : vector<256xf32> to vector<1x256xf32>
    %c4 = arith.constant 4 : index
    %c0_14 = arith.constant 0 : index
    %34 = vector.load %arg1[%c4, %c0_14] : memref<9x256xf32, #tpu.memory_space<vmem>>, vector<1x256xf32>
    %35 = arith.mulf %33, %34 : vector<1x256xf32>
    %c255_i32 = arith.constant 255 : i32
    %36 = tpu.dynamic_rotate %5 by %c255_i32 dim 1 : vector<8x256xf32>, i32 -> vector<8x256xf32>
    %37 = arith.mulf %4, %36 : vector<8x256xf32>
    %cst_15 = arith.constant dense<0.000000e+00> : vector<256xf32>
    %38 = vector.multi_reduction <add>, %37, %cst_15 [0] : vector<8x256xf32> to vector<256xf32>
    %39 = vector.shape_cast %38 : vector<256xf32> to vector<1x256xf32>
    %c5 = arith.constant 5 : index
    %c0_16 = arith.constant 0 : index
    %40 = vector.load %arg1[%c5, %c0_16] : memref<9x256xf32, #tpu.memory_space<vmem>>, vector<1x256xf32>
    %41 = arith.mulf %39, %40 : vector<1x256xf32>
    %c241_i32 = arith.constant 241 : i32
    %42 = tpu.dynamic_rotate %5 by %c241_i32 dim 1 : vector<8x256xf32>, i32 -> vector<8x256xf32>
    %43 = arith.mulf %4, %42 : vector<8x256xf32>
    %cst_17 = arith.constant dense<0.000000e+00> : vector<256xf32>
    %44 = vector.multi_reduction <add>, %43, %cst_17 [0] : vector<8x256xf32> to vector<256xf32>
    %45 = vector.shape_cast %44 : vector<256xf32> to vector<1x256xf32>
    %c6 = arith.constant 6 : index
    %c0_18 = arith.constant 0 : index
    %46 = vector.load %arg1[%c6, %c0_18] : memref<9x256xf32, #tpu.memory_space<vmem>>, vector<1x256xf32>
    %47 = arith.mulf %45, %46 : vector<1x256xf32>
    %c240_i32 = arith.constant 240 : i32
    %48 = tpu.dynamic_rotate %5 by %c240_i32 dim 1 : vector<8x256xf32>, i32 -> vector<8x256xf32>
    %49 = arith.mulf %4, %48 : vector<8x256xf32>
    %cst_19 = arith.constant dense<0.000000e+00> : vector<256xf32>
    %50 = vector.multi_reduction <add>, %49, %cst_19 [0] : vector<8x256xf32> to vector<256xf32>
    %51 = vector.shape_cast %50 : vector<256xf32> to vector<1x256xf32>
    %c7 = arith.constant 7 : index
    %c0_20 = arith.constant 0 : index
    %52 = vector.load %arg1[%c7, %c0_20] : memref<9x256xf32, #tpu.memory_space<vmem>>, vector<1x256xf32>
    %53 = arith.mulf %51, %52 : vector<1x256xf32>
    %c239_i32 = arith.constant 239 : i32
    %54 = tpu.dynamic_rotate %5 by %c239_i32 dim 1 : vector<8x256xf32>, i32 -> vector<8x256xf32>
    %55 = arith.mulf %4, %54 : vector<8x256xf32>
    %cst_21 = arith.constant dense<0.000000e+00> : vector<256xf32>
    %56 = vector.multi_reduction <add>, %55, %cst_21 [0] : vector<8x256xf32> to vector<256xf32>
    %57 = vector.shape_cast %56 : vector<256xf32> to vector<1x256xf32>
    %c8 = arith.constant 8 : index
    %c0_22 = arith.constant 0 : index
    %58 = vector.load %arg1[%c8, %c0_22] : memref<9x256xf32, #tpu.memory_space<vmem>>, vector<1x256xf32>
    %59 = arith.mulf %57, %58 : vector<1x256xf32>
    %60 = arith.maximumf %12, %18 : vector<1x256xf32>
    %61 = arith.maximumf %60, %24 : vector<1x256xf32>
    %62 = arith.maximumf %61, %30 : vector<1x256xf32>
    %63 = arith.maximumf %62, %35 : vector<1x256xf32>
    %64 = arith.maximumf %63, %41 : vector<1x256xf32>
    %65 = arith.maximumf %64, %47 : vector<1x256xf32>
    %66 = arith.maximumf %65, %53 : vector<1x256xf32>
    %67 = arith.maximumf %66, %59 : vector<1x256xf32>
    %68 = arith.subf %12, %67 : vector<1x256xf32>
    %69 = math.exp %68 : vector<1x256xf32>
    %70 = arith.subf %18, %67 : vector<1x256xf32>
    %71 = math.exp %70 : vector<1x256xf32>
    %72 = arith.subf %24, %67 : vector<1x256xf32>
    %73 = math.exp %72 : vector<1x256xf32>
    %74 = arith.subf %30, %67 : vector<1x256xf32>
    %75 = math.exp %74 : vector<1x256xf32>
    %76 = arith.subf %35, %67 : vector<1x256xf32>
    %77 = math.exp %76 : vector<1x256xf32>
    %78 = arith.subf %41, %67 : vector<1x256xf32>
    %79 = math.exp %78 : vector<1x256xf32>
    %80 = arith.subf %47, %67 : vector<1x256xf32>
    %81 = math.exp %80 : vector<1x256xf32>
    %82 = arith.subf %53, %67 : vector<1x256xf32>
    %83 = math.exp %82 : vector<1x256xf32>
    %84 = arith.subf %59, %67 : vector<1x256xf32>
    %85 = math.exp %84 : vector<1x256xf32>
    %86 = arith.addf %69, %71 : vector<1x256xf32>
    %87 = arith.addf %86, %73 : vector<1x256xf32>
    %88 = arith.addf %87, %75 : vector<1x256xf32>
    %89 = arith.addf %88, %77 : vector<1x256xf32>
    %90 = arith.addf %89, %79 : vector<1x256xf32>
    %91 = arith.addf %90, %81 : vector<1x256xf32>
    %92 = arith.addf %91, %83 : vector<1x256xf32>
    %93 = arith.addf %92, %85 : vector<1x256xf32>
    %94 = tpu.reciprocal %93 {approx = true} : vector<1x256xf32> -> vector<1x256xf32>
    %95 = arith.mulf %69, %94 : vector<1x256xf32>
    %c0_23 = arith.constant 0 : index
    %c0_24 = arith.constant 0 : index
    %96 = vector.load %arg1[%c0_23, %c0_24] : memref<9x256xf32, #tpu.memory_space<vmem>>, vector<1x256xf32>
    %97 = arith.mulf %95, %96 : vector<1x256xf32>
    %c17_i32_25 = arith.constant 17 : i32
    %98 = tpu.dynamic_rotate %6 by %c17_i32_25 dim 1 : vector<8x256xf32>, i32 -> vector<8x256xf32>
    %99 = vector.broadcast %97 : vector<1x256xf32> to vector<8x256xf32>
    %100 = arith.mulf %98, %99 : vector<8x256xf32>
    %101 = arith.mulf %71, %94 : vector<1x256xf32>
    %c1_26 = arith.constant 1 : index
    %c0_27 = arith.constant 0 : index
    %102 = vector.load %arg1[%c1_26, %c0_27] : memref<9x256xf32, #tpu.memory_space<vmem>>, vector<1x256xf32>
    %103 = arith.mulf %101, %102 : vector<1x256xf32>
    %c16_i32_28 = arith.constant 16 : i32
    %104 = tpu.dynamic_rotate %6 by %c16_i32_28 dim 1 : vector<8x256xf32>, i32 -> vector<8x256xf32>
    %105 = vector.broadcast %103 : vector<1x256xf32> to vector<8x256xf32>
    %106 = arith.mulf %104, %105 : vector<8x256xf32>
    %107 = arith.addf %100, %106 : vector<8x256xf32>
    %108 = arith.mulf %73, %94 : vector<1x256xf32>
    %c2_29 = arith.constant 2 : index
    %c0_30 = arith.constant 0 : index
    %109 = vector.load %arg1[%c2_29, %c0_30] : memref<9x256xf32, #tpu.memory_space<vmem>>, vector<1x256xf32>
    %110 = arith.mulf %108, %109 : vector<1x256xf32>
    %c15_i32_31 = arith.constant 15 : i32
    %111 = tpu.dynamic_rotate %6 by %c15_i32_31 dim 1 : vector<8x256xf32>, i32 -> vector<8x256xf32>
    %112 = vector.broadcast %110 : vector<1x256xf32> to vector<8x256xf32>
    %113 = arith.mulf %111, %112 : vector<8x256xf32>
    %114 = arith.addf %107, %113 : vector<8x256xf32>
    %115 = arith.mulf %75, %94 : vector<1x256xf32>
    %c3_32 = arith.constant 3 : index
    %c0_33 = arith.constant 0 : index
    %116 = vector.load %arg1[%c3_32, %c0_33] : memref<9x256xf32, #tpu.memory_space<vmem>>, vector<1x256xf32>
    %117 = arith.mulf %115, %116 : vector<1x256xf32>
    %c1_i32_34 = arith.constant 1 : i32
    %118 = tpu.dynamic_rotate %6 by %c1_i32_34 dim 1 : vector<8x256xf32>, i32 -> vector<8x256xf32>
    %119 = vector.broadcast %117 : vector<1x256xf32> to vector<8x256xf32>
    %120 = arith.mulf %118, %119 : vector<8x256xf32>
    %121 = arith.addf %114, %120 : vector<8x256xf32>
    %122 = arith.mulf %77, %94 : vector<1x256xf32>
    %c4_35 = arith.constant 4 : index
    %c0_36 = arith.constant 0 : index
    %123 = vector.load %arg1[%c4_35, %c0_36] : memref<9x256xf32, #tpu.memory_space<vmem>>, vector<1x256xf32>
    %124 = arith.mulf %122, %123 : vector<1x256xf32>
    %125 = vector.broadcast %124 : vector<1x256xf32> to vector<8x256xf32>
    %126 = arith.mulf %6, %125 : vector<8x256xf32>
    %127 = arith.addf %121, %126 : vector<8x256xf32>
    %128 = arith.mulf %79, %94 : vector<1x256xf32>
    %c5_37 = arith.constant 5 : index
    %c0_38 = arith.constant 0 : index
    %129 = vector.load %arg1[%c5_37, %c0_38] : memref<9x256xf32, #tpu.memory_space<vmem>>, vector<1x256xf32>
    %130 = arith.mulf %128, %129 : vector<1x256xf32>
    %c255_i32_39 = arith.constant 255 : i32
    %131 = tpu.dynamic_rotate %6 by %c255_i32_39 dim 1 : vector<8x256xf32>, i32 -> vector<8x256xf32>
    %132 = vector.broadcast %130 : vector<1x256xf32> to vector<8x256xf32>
    %133 = arith.mulf %131, %132 : vector<8x256xf32>
    %134 = arith.addf %127, %133 : vector<8x256xf32>
    %135 = arith.mulf %81, %94 : vector<1x256xf32>
    %c6_40 = arith.constant 6 : index
    %c0_41 = arith.constant 0 : index
    %136 = vector.load %arg1[%c6_40, %c0_41] : memref<9x256xf32, #tpu.memory_space<vmem>>, vector<1x256xf32>
    %137 = arith.mulf %135, %136 : vector<1x256xf32>
    %c241_i32_42 = arith.constant 241 : i32
    %138 = tpu.dynamic_rotate %6 by %c241_i32_42 dim 1 : vector<8x256xf32>, i32 -> vector<8x256xf32>
    %139 = vector.broadcast %137 : vector<1x256xf32> to vector<8x256xf32>
    %140 = arith.mulf %138, %139 : vector<8x256xf32>
    %141 = arith.addf %134, %140 : vector<8x256xf32>
    %142 = arith.mulf %83, %94 : vector<1x256xf32>
    %c7_43 = arith.constant 7 : index
    %c0_44 = arith.constant 0 : index
    %143 = vector.load %arg1[%c7_43, %c0_44] : memref<9x256xf32, #tpu.memory_space<vmem>>, vector<1x256xf32>
    %144 = arith.mulf %142, %143 : vector<1x256xf32>
    %c240_i32_45 = arith.constant 240 : i32
    %145 = tpu.dynamic_rotate %6 by %c240_i32_45 dim 1 : vector<8x256xf32>, i32 -> vector<8x256xf32>
    %146 = vector.broadcast %144 : vector<1x256xf32> to vector<8x256xf32>
    %147 = arith.mulf %145, %146 : vector<8x256xf32>
    %148 = arith.addf %141, %147 : vector<8x256xf32>
    %149 = arith.mulf %85, %94 : vector<1x256xf32>
    %c8_46 = arith.constant 8 : index
    %c0_47 = arith.constant 0 : index
    %150 = vector.load %arg1[%c8_46, %c0_47] : memref<9x256xf32, #tpu.memory_space<vmem>>, vector<1x256xf32>
    %151 = arith.mulf %149, %150 : vector<1x256xf32>
    %c239_i32_48 = arith.constant 239 : i32
    %152 = tpu.dynamic_rotate %6 by %c239_i32_48 dim 1 : vector<8x256xf32>, i32 -> vector<8x256xf32>
    %153 = vector.broadcast %151 : vector<1x256xf32> to vector<8x256xf32>
    %154 = arith.mulf %152, %153 : vector<8x256xf32>
    %155 = arith.addf %148, %154 : vector<8x256xf32>
    %c0_49 = arith.constant 0 : index
    %c0_50 = arith.constant 0 : index
    %c0_51 = arith.constant 0 : index
    %156 = vector.load %arg4[%c0_49, %c0_50, %c0_51] : memref<1x8x256xf32, #tpu.memory_space<vmem>>, vector<1x8x256xf32>
    %157 = vector.shape_cast %156 : vector<1x8x256xf32> to vector<8x256xf32>
    %158 = vector.shape_cast %155 : vector<8x256xf32> to vector<1x8x256xf32>
    tpu.vector_store %arg4[%c0_49, %c0_50, %c0_51], %158 {strides = array<i32>} : memref<1x8x256xf32, #tpu.memory_space<vmem>>, vector<1x8x256xf32>,
    return
  }
  func.func @transform_0(%arg0: i32) -> (i32, i32) {
    %c0_i32 = arith.constant 0 : i32
    %c0_i32_0 = arith.constant 0 : i32
    %c0_i32_1 = arith.constant 0 : i32
    return %c0_i32, %c0_i32_0 : i32, i32
  }
  func.func @transform_1(%arg0: i32) -> (i32, i32, i32) {
    %c0_i32 = arith.constant 0 : i32
    %c0_i32_0 = arith.constant 0 : i32
    %c0_i32_1 = arith.constant 0 : i32
    return %arg0, %c0_i32, %c0_i32_0 : i32, i32, i32
  }
  func.func @transform_2(%arg0: i32) -> (i32, i32) {
    %c0_i32 = arith.constant 0 : i32
    %c0_i32_0 = arith.constant 0 : i32
    %c0_i32_1 = arith.constant 0 : i32
    return %c0_i32, %c0_i32_0 : i32, i32
  }
  func.func @transform_3(%arg0: i32) -> (i32, i32, i32) {
    %c0_i32 = arith.constant 0 : i32
    %c0_i32_0 = arith.constant 0 : i32
    %c0_i32_1 = arith.constant 0 : i32
    return %arg0, %c0_i32, %c0_i32_0 : i32, i32, i32
  }
}

</mosaic_0001>

<bundles_post_ra>
// kernel: torch_local_attention.1
= control target key start
LH: loop header
LB: loop body
LE: loop exit
PB: predicated region body
PF: predicated region fallthrough
CT: control target
= control target key end

     0   :  { %s1051_s12 = smov 0   ;;  %s1464_s0 = inlined_call_operand.vmem [shape: f32[9,256], index: 0, kind: input, shape index: {}]   ;;  %s1465_s1 = inlined_call_operand.vmem [shape: f32[2,4,256], index: 1, kind: input, shape index: {}]   ;;  %s1466_s2 = inlined_call_operand.vmem [shape: f32[24,4], index: 2, kind: input, shape index: {}]   ;;  %s1467_s3 = inlined_call_operand.vmem [shape: f32[2,8,256], index: 3, kind: output, shape index: {}]  }
   0x1 LB: > { %s928_s13 = sadd.s32 4294967295, %s1020_s12   ;;  %p932_p0 = scmp.ge.s32.totalorder %s1020_s12, 1  ;;  %s1020_s12 = sphi %s1051_s12, %s13_s12  }
   0x2   : > { %p137_p1 = scmp.lt.s32.totalorder %s1020_s12, 3 }
   0x4   : > { %p138_p2 = pnand %p932_p0, %p137_p1 }
   0x6   : > { %141 = sbr.rel (%p138_p2) target bundleno = 477 (0x1dd), region = 32 }
   0xd   : > { %p161_p3 = scmp.lt.s32.totalorder %s928_s13, 1  ;;  %v1022_v0 = vmov 0.0   ;;  %vm187_vm0 = vcmask 1043456   ;;  %v172_v3 = vld [vmem:[%s1466_s2] sm:$0xff]  ;;  %vm177_vm1 = vcmask 31744   ;;  %v173_v4 = vld [vmem:[%s1466_s2 + $0x8] sm:$0xff]  ;;  %v279_v18 = vlaneseq }
   0xe   : > { %256 = vmatprep.mubr.f32.mxu0 %v1022_v0  ;;  %262 = vmatprep.mubr.f32.mxu1 %v1022_v0  ;;  %v174_v5 = vld [vmem:[%s1466_s2 + $0x10] sm:$0xff]  ;;  %s1023_s24 = smov 16   ;;  %s1024_s25 = smov 17   ;;  %v945_v34 = vld [vmem:[%s1464_s0 + $0x4] ss:$8 sm:$0x3] }
   0xf   : > { %s1485_s13 = smov (!%p161_p3, %s928_s13), 1  ;;  %s1025_s26 = smov 15   ;;  %v1104_v19 = vand.u32 127, %v279_v18  ;;  %v301_v24 = vshrl.u32 %v279_v18, 7 }
  0x10   : > { %s952_s14 = sshll.u32 %s1485_s13, 3  ;;  %s1026_s27 = smov 1   ;;  %v942_v36 = vld [vmem:[%s1464_s0 + $0x1] ss:$8 sm:$0x3] }
  0x11   : > { %s165_s17 = scalar_lea.vmem %s1465_s1, %s952_s14  ;;  %s1027_s28 = smov 127   ;;  %1476 = vst [vmem:[#allocation4_spill] sm:$0xff] %v1104_v19  ;;  %vm316_vm2 = vcmp.lt.s32.totalorder %v1104_v19, 16  ;;  %v1107_v29 = vsub.s32 0, %v301_v24  ;;  %vm352_vm3 = vcmp.lt.s32.totalorder %v1104_v19, 15  ;;  %v1119_v35 = vsub.s32 1, %v301_v24 }
  0x12   : > { %v171_v1 = vld [vmem:[%s165_s17] sm:$0xff]  ;;  %s1028_s29 = smov 113   ;;  %s1029_s30 = smov 112   ;;  %vm388_vm4 = vcmp.lt.s32.totalorder %v1104_v19, 1  ;;  %vm281_vm5 = vcmp.lt.s32.totalorder %v1104_v19, 17  ;;  %vm453_vm6 = vcmp.lt.s32.totalorder %v1104_v19, 127 }
  0x13   : > { %v176_v2 = vcombine.high %v171_v1, %v171_v1  ;;  %s1030_s4 = smov 111   ;;  %v1129_v45 = vrot.slane %v945_v34, %v1107_v29  ;;  %v1137_v48 = vrot.slane %v942_v36, %v1107_v29  ;;  %v1140_v49 = vrot.slane %v942_v36, %v1119_v35  ;;  %v943_v50 = vld [vmem:[%s1464_s0 + $0x2] ss:$8 sm:$0x3] }
  0x14   : > { %v1146_v51 = vrot.slane %v945_v34, %v1119_v35  ;;  %v298_v62 = vld [vmem:[%s1464_s0] ss:$8 sm:$0x3]  ;;  %vm489_vm7 = vcmp.lt.s32.totalorder %v1104_v19, 113  ;;  %vm525_vm8 = vcmp.lt.s32.totalorder %v1104_v19, 112  ;;  %vm561_vm9 = vcmp.lt.s32.totalorder %v1104_v19, 111 }
  0x15   : > { %937 = vmatprep.subr.msk.mxu0 %vm187_vm0, %v176_v2  ;;  %954 = vmatprep.subr.msk.mxu1 %vm187_vm0, %v176_v2  ;;  %1477 = vst [vmem:[#allocation5_spill] sm:$0xff] %v1129_v45  ;;  %v1184_v24 = vrot.slane %v298_v62, %v1119_v35 }
  0x16   : > { %938 = vmatpush1.msk.msra.mxu0 %vm187_vm0, %v171_v1  ;;  %955 = vmatpush1.msk.msra.mxu1 %vm187_vm0, %v171_v1  ;;  %1478 = vst [vmem:[#allocation6_spill] sm:$0xff] %v1146_v51  ;;  %v1161_v1 = vrot.slane %v943_v50, %v1107_v29 }
  0x17   : > { %939 = vmatmul.mubr.msk.f32.vlgmr.msra.gmra.mrb[0].mxu0 %vm177_vm1, %v172_v3  ;;  %940 = vmatmul.mubr.msk.f32.vlgmr.msra.gmra.mrb[0].mxu1 %vm177_vm1, %v173_v4 }
  0x18   : > { %268 = vmatprep.mubr.f32.mxu1 %v1022_v0 }
  0x1b   : > { %941 = vmatmul.mubr.msk.f32.gmra.mrb[2].mxu1 %vm177_vm1, %v174_v5 }
  0xea   : > { %v1074_v6 = vpop.f32.mrb[0].mxu0  ;;  %v264_v7 = vpop.f32.mrb[0].mxu1 }
  0xeb   : > { %v420_v8 = vmul.f32 %v264_v7, %v1074_v6  ;;  %312 = vrot.lane.b32.xlu1 %v264_v7, %s1023_s24  ;;  %275 = vrot.lane.b32.xlu0 %v264_v7, %s1024_s25  ;;  %v1078_v9 = vpop.f32.mrb[1].mxu0  ;;  %v266_v10 = vpop.f32.mrb[1].mxu1 }
  0xec   : > { %v421_v11 = vmul.f32 %v266_v10, %v1078_v9 }
  0xed   : > { %v422_v14 = vrot.slane %v420_v8, 4 }
  0xee   : > { %v1081_v12 = vpop.f32.mrb[2].mxu1  ;;  %v428_v15 = vrot.slane %v421_v11, 4 }
  0xef   : > { %1474 = vst [vmem:[#allocation2_spill] sm:$0xff] %v1081_v12  ;;  %348 = vrot.lane.b32.xlu0 %v264_v7, %s1025_s26  ;;  %314 = vrot.lane.b32.xlu1 %v266_v10, %s1023_s24  ;;  %v1084_v13 = vpop.f32.mrb[3].mxu1  ;;  %v423_v16 = vadd.f32 %v422_v14, %v420_v8  ;;  %v1174_v14 = vrot.slane %v943_v50, %v1119_v35 }
  0xf0   : > { %1475 = vst [vmem:[#allocation3_spill] sm:$0xff] %v1084_v13  ;;  %v429_v17 = vadd.f32 %v428_v15, %v421_v11  ;;  %v1171_v11 = vrot.slane %v298_v62, %v1107_v29 }
  0xf1   : > { %v424_v22 = vrot.slane %v423_v16, 2 }
  0xf2   : > { %v430_v23 = vrot.slane %v429_v17, 2 }
  0xf3   : > { %384 = vrot.lane.b32.xlu0 %v264_v7, %s1026_s27  ;;  %350 = vrot.lane.b32.xlu1 %v266_v10, %s1025_s26  ;;  %v425_v27 = vadd.f32 %v424_v22, %v423_v16 }
  0xf4   : > { %v431_v28 = vadd.f32 %v430_v23, %v429_v17 }
  0xf5   : > { %v426_v41 = vrot.slane %v425_v27, 1 }
  0xf6   : > { %v432_v42 = vrot.slane %v431_v28, 1 }
  0xf7   : > { %386 = vrot.lane.b32.xlu1 %v266_v10, %s1026_s27  ;;  %277 = vrot.lane.b32.xlu0 %v266_v10, %s1024_s25  ;;  %v427_v56 = vadd.f32 %v426_v41, %v425_v27 }
  0xf8   : > { %v433_v57 = vadd.f32 %v432_v42, %v431_v28 }
  0xf9   : > { %v1177_v15 = vmul.f32 %v1129_v45, %v427_v56 }
  0xfa   : > { %v1180_v16 = vmul.f32 %v1146_v51, %v433_v57 }
  0xfb   : > { %451 = vrot.lane.b32.xlu1 %v266_v10, %s1027_s28  ;;  %449 = vrot.lane.b32.xlu0 %v264_v7, %s1027_s28 }
  0xff   : > { %487 = vrot.lane.b32.xlu1 %v266_v10, %s1028_s29  ;;  %485 = vrot.lane.b32.xlu0 %v264_v7, %s1028_s29 }
 0x103   : > { %523 = vrot.lane.b32.xlu1 %v266_v10, %s1029_s30  ;;  %521 = vrot.lane.b32.xlu0 %v264_v7, %s1029_s30 }
 0x107   : > { %559 = vrot.lane.b32.xlu1 %v266_v10, %s1030_s4  ;;  %557 = vrot.lane.b32.xlu0 %v264_v7, %s1030_s4  ;;  %v944_v7 = vld [vmem:[%s1464_s0 + $0x3] ss:$8 sm:$0x3] }
 0x10b   : > { %685 = vrot.lane.b32.xlu0 %v1081_v12, %s1024_s25  ;;  %687 = vrot.lane.b32.xlu1 %v1084_v13, %s1024_s25  ;;  %s953_s25 = sshll.u32 %s1485_s13, 4 }
 0x10f   : > { %705 = vrot.lane.b32.xlu0 %v1081_v12, %s1023_s24  ;;  %707 = vrot.lane.b32.xlu1 %v1084_v13, %s1023_s24 }
 0x113   : > { %727 = vrot.lane.b32.xlu0 %v1081_v12, %s1025_s26  ;;  %729 = vrot.lane.b32.xlu1 %v1084_v13, %s1025_s26 }
 0x117   : > { %749 = vrot.lane.b32.xlu0 %v1081_v12, %s1026_s27  ;;  %751 = vrot.lane.b32.xlu1 %v1084_v13, %s1026_s27 }
 0x11b   : > { %787 = vrot.lane.b32.xlu0 %v1081_v12, %s1027_s28  ;;  %789 = vrot.lane.b32.xlu1 %v1084_v13, %s1027_s28  ;;  %s170_s28 = scalar_lea.vmem %s1467_s3, %s953_s25 }
 0x11f   : > { %809 = vrot.lane.b32.xlu0 %v1081_v12, %s1028_s29  ;;  %811 = vrot.lane.b32.xlu1 %v1084_v13, %s1028_s29 }
 0x123   : > { %831 = vrot.lane.b32.xlu0 %v1081_v12, %s1029_s30  ;;  %833 = vrot.lane.b32.xlu1 %v1084_v13, %s1029_s30 }
 0x127   : > { %853 = vrot.lane.b32.xlu0 %v1081_v12, %s1030_s4  ;;  %855 = vrot.lane.b32.xlu1 %v1084_v13, %s1030_s4 }
 0x15d   : > { %v313_v20 = vpop.permute.xlu1 %312  ;;  %v276_v21 = vpop.permute.xlu0 %275 }
 0x161   : > { %v349_v25 = vpop.permute.xlu0 %348  ;;  %v315_v26 = vpop.permute.xlu1 %314 }
 0x162   : > { %v317_v30 = vsel %vm316_vm2, %v313_v20, %v315_v26  ;;  %v318_v31 = vsel %vm316_vm2, %v315_v26, %v313_v20  ;;  %v946_v26 = vld [vmem:[%s1464_s0 + $0x5] ss:$8 sm:$0x3] }
 0x163   : > { %v319_v32 = vmul.f32 %v318_v31, %v1074_v6  ;;  %v320_v33 = vmul.f32 %v317_v30, %v1078_v9  ;;  %v1208_v41 = vrot.slane %v946_v26, %v1119_v35 }
 0x165   : > { %v321_v37 = vrot.slane %v319_v32, 4  ;;  %v327_v38 = vrot.slane %v320_v33, 4  ;;  %v385_v39 = vpop.permute.xlu0 %384  ;;  %v351_v40 = vpop.permute.xlu1 %350 }
 0x166   : > { %v353_v43 = vsel %vm352_vm3, %v349_v25, %v351_v40  ;;  %v354_v44 = vsel %vm352_vm3, %v351_v40, %v349_v25  ;;  %v1187_v25 = vrot.slane %v944_v7, %v1107_v29  ;;  %v1205_v40 = vrot.slane %v946_v26, %v1107_v29 }
 0x167   : > { %v355_v46 = vmul.f32 %v354_v44, %v1074_v6  ;;  %v356_v47 = vmul.f32 %v353_v43, %v1078_v9  ;;  %v322_v52 = vadd.f32 %v321_v37, %v319_v32  ;;  %v328_v53 = vadd.f32 %v327_v38, %v320_v33 }
 0x168   : > { %v1198_v37 = vrot.slane %v944_v7, %v1119_v35 }
 0x169   : > { %v387_v54 = vpop.permute.xlu1 %386  ;;  %v278_v55 = vpop.permute.xlu0 %277  ;;  %v357_v63 = vrot.slane %v355_v46, 4  ;;  %v363_v0 = vrot.slane %v356_v47, 4  ;;  %v323_v17 = vrot.slane %v322_v52, 2  ;;  %v329_v18 = vrot.slane %v328_v53, 2 }
 0x16a   : > { %v389_v58 = vsel %vm388_vm4, %v385_v39, %v387_v54  ;;  %v390_v59 = vsel %vm388_vm4, %v387_v54, %v385_v39  ;;  %v282_v60 = vsel %vm281_vm5, %v276_v21, %v278_v55  ;;  %v283_v61 = vsel %vm281_vm5, %v278_v55, %v276_v21 }
 0x16b   : > { %v391_v2 = vmul.f32 %v390_v59, %v1074_v6  ;;  %v392_v3 = vmul.f32 %v389_v58, %v1078_v9  ;;  %v284_v4 = vmul.f32 %v283_v61, %v1074_v6  ;;  %v285_v5 = vmul.f32 %v282_v60, %v1078_v9 }
 0x16c   : > { %v358_v27 = vadd.f32 %v357_v63, %v355_v46  ;;  %v364_v28 = vadd.f32 %v363_v0, %v356_v47  ;;  %v1200_v38 = vadd.f32 %v323_v17, %v322_v52  ;;  %v1202_v39 = vadd.f32 %v329_v18, %v328_v53  ;;  %v947_v47 = vld [vmem:[%s1464_s0 + $0x6] ss:$8 sm:$0x3] }
 0x16d   : > { %v452_v8 = vpop.permute.xlu1 %451  ;;  %v450_v10 = vpop.permute.xlu0 %449  ;;  %v286_v20 = vrot.slane %v284_v4, 4  ;;  %v292_v21 = vrot.slane %v285_v5, 4  ;;  %v393_v22 = vrot.slane %v391_v2, 4  ;;  %v399_v23 = vrot.slane %v392_v3, 4 }
 0x16e   : > { %v454_v32 = vsel %vm453_vm6, %v450_v10, %v452_v8  ;;  %v455_v33 = vsel %vm453_vm6, %v452_v8, %v450_v10  ;;  %v359_v50 = vrot.slane %v358_v27, 2  ;;  %v365_v52 = vrot.slane %v364_v28, 2 }
 0x16f   : > { %v287_v30 = vadd.f32 %v286_v20, %v284_v4  ;;  %v293_v31 = vadd.f32 %v292_v21, %v285_v5  ;;  %v394_v42 = vadd.f32 %v393_v22, %v391_v2  ;;  %v400_v43 = vadd.f32 %v399_v23, %v392_v3 }
 0x170   : > { %v456_v44 = vmul.f32 %v454_v32, %v1074_v6  ;;  %v457_v46 = vmul.f32 %v455_v33, %v1078_v9  ;;  %v325_v61 = vrot.slane %v1200_v38, 1  ;;  %v331_v62 = vrot.slane %v1202_v39, 1 }
 0x171   : > { %v488_v34 = vpop.permute.xlu1 %487  ;;  %v486_v36 = vpop.permute.xlu0 %485  ;;  %v288_v53 = vrot.slane %v287_v30, 2  ;;  %v294_v54 = vrot.slane %v293_v31, 2  ;;  %v1222_v63 = vrot.slane %v947_v47, %v1107_v29  ;;  %v1225_v0 = vrot.slane %v947_v47, %v1119_v35 }
 0x172   : > { %v458_v55 = vrot.slane %v456_v44, 4  ;;  %v464_v56 = vrot.slane %v457_v46, 4  ;;  %v490_v57 = vsel %vm489_vm7, %v486_v36, %v488_v34  ;;  %v491_v58 = vsel %vm489_vm7, %v488_v34, %v486_v36 }
 0x173   : > { %v395_v2 = vrot.slane %v394_v42, 2  ;;  %v401_v3 = vrot.slane %v400_v43, 2  ;;  %v492_v4 = vmul.f32 %v490_v57, %v1074_v6  ;;  %v493_v5 = vmul.f32 %v491_v58, %v1078_v9 }
 0x174   : > { %v360_v7 = vadd.f32 %v359_v50, %v358_v27  ;;  %v366_v8 = vadd.f32 %v365_v52, %v364_v28  ;;  %v289_v10 = vadd.f32 %v288_v53, %v287_v30  ;;  %v295_v17 = vadd.f32 %v294_v54, %v293_v31 }
 0x175   : > { %v524_v59 = vpop.permute.xlu1 %523  ;;  %v522_v60 = vpop.permute.xlu0 %521  ;;  %v459_v18 = vadd.f32 %v458_v55, %v456_v44  ;;  %v465_v20 = vadd.f32 %v464_v56, %v457_v46  ;;  %v494_v21 = vrot.slane %v492_v4, 4  ;;  %v500_v22 = vrot.slane %v493_v5, 4 }
 0x176   : > { %v526_v32 = vsel %vm525_vm8, %v522_v60, %v524_v59  ;;  %v527_v33 = vsel %vm525_vm8, %v524_v59, %v522_v60  ;;  %v396_v28 = vadd.f32 %v395_v2, %v394_v42  ;;  %v402_v30 = vadd.f32 %v401_v3, %v400_v43 }
 0x177   : > { %v495_v31 = vadd.f32 %v494_v21, %v492_v4  ;;  %v501_v36 = vadd.f32 %v500_v22, %v493_v5  ;;  %v528_v44 = vmul.f32 %v526_v32, %v1074_v6  ;;  %v529_v46 = vmul.f32 %v527_v33, %v1078_v9 }
 0x178   : > { %v290_v52 = vrot.slane %v289_v10, 1  ;;  %v296_v53 = vrot.slane %v295_v17, 1  ;;  %v460_v54 = vrot.slane %v459_v18, 2  ;;  %v466_v55 = vrot.slane %v465_v20, 2 }
 0x179   : > { %v560_v23 = vpop.permute.xlu1 %559  ;;  %v558_v26 = vpop.permute.xlu0 %557  ;;  %v530_v56 = vrot.slane %v528_v44, 4  ;;  %v536_v57 = vrot.slane %v529_v46, 4  ;;  %v361_v42 = vrot.slane %v360_v7, 1  ;;  %v367_v43 = vrot.slane %v366_v8, 1 }
 0x17a   : > { %v562_v34 = vsel %vm561_vm9, %v558_v26, %v560_v23  ;;  %v563_v27 = vsel %vm561_vm9, %v560_v23, %v558_v26  ;;  %v496_v60 = vrot.slane %v495_v31, 2  ;;  %v502_v2 = vrot.slane %v501_v36, 2 }
 0x17b   : > { %v564_v47 = vmul.f32 %v562_v34, %v1074_v6  ;;  %v565_v50 = vmul.f32 %v563_v27, %v1078_v9  ;;  %v531_v3 = vadd.f32 %v530_v56, %v528_v44  ;;  %v537_v4 = vadd.f32 %v536_v57, %v529_v46 }
 0x17c   : > { %v397_v22 = vrot.slane %v396_v28, 1  ;;  %v403_v6 = vrot.slane %v402_v30, 1  ;;  %v291_v23 = vadd.f32 %v290_v52, %v289_v10  ;;  %v297_v9 = vadd.f32 %v296_v53, %v295_v17 }
 0x17d   : > { %v566_v58 = vrot.slane %v564_v47, 4  ;;  %v572_v59 = vrot.slane %v565_v50, 4  ;;  %v461_v26 = vadd.f32 %v460_v54, %v459_v18  ;;  %v467_v32 = vadd.f32 %v466_v55, %v465_v20 }
 0x17e   : > { %v532_v33 = vrot.slane %v531_v3, 2  ;;  %v538_v34 = vrot.slane %v537_v4, 2  ;;  %v326_v27 = vadd.f32 %v325_v61, %v1200_v38  ;;  %v332_v13 = vadd.f32 %v331_v62, %v1202_v39 }
 0x17f   : > { %v567_v5 = vadd.f32 %v566_v58, %v564_v47  ;;  %v573_v21 = vadd.f32 %v572_v59, %v565_v50  ;;  %v362_v45 = vadd.f32 %v361_v42, %v360_v7  ;;  %v368_v19 = vadd.f32 %v367_v43, %v366_v8 }
 0x180   : > { %v497_v44 = vadd.f32 %v496_v60, %v495_v31  ;;  %v503_v46 = vadd.f32 %v502_v2, %v501_v36  ;;  %v533_v47 = vadd.f32 %v532_v33, %v531_v3  ;;  %v539_v50 = vadd.f32 %v538_v34, %v537_v4 }
 0x181   : > { %v568_v12 = vrot.slane %v567_v5, 2  ;;  %v574_v51 = vrot.slane %v573_v21, 2  ;;  %v1244_v56 = vmul.f32 %v1171_v11, %v291_v23  ;;  %v1247_v10 = vmul.f32 %v1184_v24, %v297_v9 }
 0x182   : > { %v398_v17 = vadd.f32 %v397_v22, %v396_v28  ;;  %v404_v18 = vadd.f32 %v403_v6, %v402_v30  ;;  %v462_v20 = vrot.slane %v461_v26, 1  ;;  %v468_v38 = vrot.slane %v467_v32, 1  ;;  %v948_v28 = vld [vmem:[%s1464_s0 + $0x7] ss:$8 sm:$0x3] }
 0x183   : > { %v569_v61 = vadd.f32 %v568_v12, %v567_v5  ;;  %v575_v39 = vadd.f32 %v574_v51, %v573_v21  ;;  %v346_v62 = vmul.f32 %v1137_v48, %v326_v27  ;;  %v347_v7 = vmul.f32 %v1140_v49, %v332_v13 }
 0x184   : > { %v498_v8 = vrot.slane %v497_v44, 1  ;;  %v504_v31 = vrot.slane %v503_v46, 1  ;;  %v382_v36 = vmul.f32 %v1161_v1, %v362_v45  ;;  %v383_v52 = vmul.f32 %v1174_v14, %v368_v19  ;;  %v949_v19 = vld [vmem:[%s1464_s0 + $0x10] ss:$8 sm:$0x3] }
 0x185   : > { %v534_v53 = vrot.slane %v533_v47, 1  ;;  %v540_v54 = vrot.slane %v539_v50, 1  ;;  %v593_v30 = vmax.f32 %v1244_v56, %v346_v62  ;;  %v594_v12 = vmax.f32 %v1247_v10, %v347_v7 }
 0x186   : > { %v463_v51 = vadd.f32 %v462_v20, %v461_v26  ;;  %v469_v55 = vadd.f32 %v468_v38, %v467_v32  ;;  %v418_v13 = vmul.f32 %v1187_v25, %v398_v17  ;;  %v419_v57 = vmul.f32 %v1198_v37, %v404_v18 }
 0x187   : > { %v570_v58 = vrot.slane %v569_v61, 1  ;;  %v576_v45 = vrot.slane %v575_v39, 1  ;;  %v595_v59 = vmax.f32 %v593_v30, %v382_v36  ;;  %v596_v42 = vmax.f32 %v594_v12, %v383_v52 }
 0x188   : > { %v499_v43 = vadd.f32 %v498_v8, %v497_v44  ;;  %v505_v60 = vadd.f32 %v504_v31, %v503_v46  ;;  %v1264_v2 = vrot.slane %v948_v28, %v1107_v29  ;;  %v1267_v3 = vrot.slane %v948_v28, %v1119_v35 }
 0x189   : > { %v535_v4 = vadd.f32 %v534_v53, %v533_v47  ;;  %v541_v5 = vadd.f32 %v540_v54, %v539_v50  ;;  %v597_v21 = vmax.f32 %v595_v59, %v418_v13  ;;  %v598_v22 = vmax.f32 %v596_v42, %v419_v57 }
 0x18a   : > { %v1270_v6 = vrot.slane %v949_v19, %v1107_v29  ;;  %v1273_v23 = vrot.slane %v949_v19, %v1119_v35  ;;  %v483_v9 = vmul.f32 %v1205_v40, %v463_v51  ;;  %v484_v26 = vmul.f32 %v1208_v41, %v469_v55 }
 0x18b   : > { %v571_v32 = vadd.f32 %v570_v58, %v569_v61  ;;  %v577_v33 = vadd.f32 %v576_v45, %v575_v39  ;;  %v599_v34 = vmax.f32 %v597_v21, %v1177_v15  ;;  %v600_v27 = vmax.f32 %v598_v22, %v1180_v16 }
 0x18c   : > { %v519_v44 = vmul.f32 %v1222_v63, %v499_v43  ;;  %v520_v46 = vmul.f32 %v1225_v0, %v505_v60  ;;  %v555_v47 = vmul.f32 %v1264_v2, %v535_v4  ;;  %v556_v50 = vmul.f32 %v1267_v3, %v541_v5 }
 0x18d   : > { %v601_v35 = vmax.f32 %v599_v34, %v483_v9  ;;  %v602_v17 = vmax.f32 %v600_v27, %v484_v26  ;;  %v591_v18 = vmul.f32 %v1270_v6, %v571_v32  ;;  %v592_v20 = vmul.f32 %v1273_v23, %v577_v33  ;;  %v1289_v27 = vpop.permute.xlu0 %685 }
 0x18f   : > { %v603_v38 = vmax.f32 %v601_v35, %v519_v44  ;;  %v604_v61 = vmax.f32 %v602_v17, %v520_v46 }
 0x191   : > { %v605_v39 = vmax.f32 %v603_v38, %v555_v47  ;;  %v606_v8 = vmax.f32 %v604_v61, %v556_v50 }
 0x193   : > { %v607_v31 = vmax.f32 %v605_v39, %v591_v18  ;;  %v608_v53 = vmax.f32 %v606_v8, %v592_v20 }
 0x195   : > { %v609_v54 = vsub.f32 %v1244_v56, %v607_v31  ;;  %v610_v28 = vsub.f32 %v1247_v10, %v608_v53  ;;  %v615_v30 = vsub.f32 %v346_v62, %v607_v31  ;;  %v616_v12 = vsub.f32 %v347_v7, %v608_v53 }
 0x196   : > { %v621_v51 = vsub.f32 %v382_v36, %v607_v31  ;;  %v622_v55 = vsub.f32 %v383_v52, %v608_v53  ;;  %v627_v58 = vsub.f32 %v418_v13, %v607_v31  ;;  %v628_v45 = vsub.f32 %v419_v57, %v608_v53 }
 0x197   : > { %v611_v19 = vmul.f32 1.442695, %v609_v54  ;;  %v613_v59 = vmul.f32 1.442695, %v610_v28  ;;  %v617_v42 = vmul.f32 1.442695, %v615_v30  ;;  %v633_v43 = vsub.f32 %v1177_v15, %v607_v31 }
 0x198   : > { %v619_v60 = vmul.f32 1.442695, %v616_v12  ;;  %v634_v4 = vsub.f32 %v1180_v16, %v608_v53  ;;  %v623_v5 = vmul.f32 1.442695, %v621_v51  ;;  %v625_v21 = vmul.f32 1.442695, %v622_v55 }
 0x199   : > { %974 = vpow2.f32 %v611_v19  ;;  %v629_v56 = vmul.f32 1.442695, %v627_v58  ;;  %v639_v10 = vsub.f32 %v483_v9, %v607_v31  ;;  %v640_v62 = vsub.f32 %v484_v26, %v608_v53  ;;  %v1291_v9 = vpop.permute.xlu1 %687 }
 0x19a   : > { %976 = vpow2.f32 %v613_v59  ;;  %v645_v7 = vsub.f32 %v519_v44, %v607_v31  ;;  %v646_v36 = vsub.f32 %v520_v46, %v608_v53  ;;  %v651_v52 = vsub.f32 %v555_v47, %v607_v31 }
 0x19b   : > { %978 = vpow2.f32 %v617_v42  ;;  %v631_v13 = vmul.f32 1.442695, %v628_v45  ;;  %v652_v57 = vsub.f32 %v556_v50, %v608_v53  ;;  %v635_v22 = vmul.f32 1.442695, %v633_v43 }
 0x19c   : > { %980 = vpow2.f32 %v619_v60  ;;  %v637_v15 = vmul.f32 1.442695, %v634_v4  ;;  %v657_v32 = vsub.f32 %v591_v18, %v607_v31  ;;  %v658_v16 = vsub.f32 %v592_v20, %v608_v53  ;;  %v706_v31 = vpop.permute.xlu0 %705 }
 0x19d   : > { %982 = vpow2.f32 %v623_v5  ;;  %v641_v33 = vmul.f32 1.442695, %v639_v10  ;;  %v643_v34 = vmul.f32 1.442695, %v640_v62  ;;  %v647_v26 = vmul.f32 1.442695, %v645_v7  ;;  %v708_v53 = vpop.permute.xlu1 %707 }
 0x19e   : > { %984 = vpow2.f32 %v625_v21  ;;  %v649_v44 = vmul.f32 1.442695, %v646_v36  ;;  %v653_v47 = vmul.f32 1.442695, %v651_v52  ;;  %v655_v35 = vmul.f32 1.442695, %v652_v57 }
 0x19f   : > { %986 = vpow2.f32 %v629_v56  ;;  %v659_v18 = vmul.f32 1.442695, %v657_v32  ;;  %v661_v38 = vmul.f32 1.442695, %v658_v16 }
 0x1a0   : > { %988 = vpow2.f32 %v631_v13  ;;  %v728_v60 = vpop.permute.xlu0 %727 }
 0x1a1   : > { %990 = vpow2.f32 %v635_v22  ;;  %v730_v4 = vpop.permute.xlu1 %729 }
 0x1a2   : > { %992 = vpow2.f32 %v637_v15 }
 0x1a3   : > { %v1293_v46 = vpop.eup %974  ;;  %994 = vpow2.f32 %v641_v33 }
 0x1a4   : > { %v1295_v50 = vpop.eup %976  ;;  %996 = vpow2.f32 %v643_v34  ;;  %v750_v32 = vpop.permute.xlu0 %749 }
 0x1a5   : > { %v1297_v17 = vpop.eup %978  ;;  %998 = vpow2.f32 %v647_v26  ;;  %v752_v16 = vpop.permute.xlu1 %751 }
 0x1a6   : > { %v1299_v20 = vpop.eup %980  ;;  %1000 = vpow2.f32 %v649_v44  ;;  %v663_v61 = vadd.f32 %v1297_v17, %v1293_v46 }
 0x1a7   : > { %v983_v39 = vpop.eup %982  ;;  %1002 = vpow2.f32 %v653_v47  ;;  %v664_v8 = vadd.f32 %v1299_v20, %v1295_v50 }
 0x1a8   : > { %v985_v54 = vpop.eup %984  ;;  %1004 = vpow2.f32 %v655_v35  ;;  %v665_v28 = vadd.f32 %v983_v39, %v663_v61  ;;  %v788_v44 = vpop.permute.xlu0 %787  ;;  %v709_v61 = vsel %vm316_vm2, %v706_v31, %v708_v53 }
 0x1a9   : > { %v987_v30 = vpop.eup %986  ;;  %1006 = vpow2.f32 %v659_v18  ;;  %v666_v12 = vadd.f32 %v985_v54, %v664_v8  ;;  %v790_v47 = vpop.permute.xlu1 %789  ;;  %v689_v18 = vsel %vm281_vm5, %v1289_v27, %v1291_v9  ;;  %v710_v8 = vsel %vm316_vm2, %v708_v53, %v706_v31 }
 0x1aa   : > { %v989_v51 = vpop.eup %988  ;;  %1008 = vpow2.f32 %v661_v38  ;;  %v667_v55 = vadd.f32 %v987_v30, %v665_v28  ;;  %v690_v38 = vsel %vm281_vm5, %v1291_v9, %v1289_v27  ;;  %v731_v28 = vsel %vm352_vm3, %v728_v60, %v730_v4 }
 0x1ab   : > { %v1305_v58 = vpop.eup %990  ;;  %v668_v45 = vadd.f32 %v989_v51, %v666_v12  ;;  %v732_v12 = vsel %vm352_vm3, %v730_v4, %v728_v60  ;;  %v1363_v31 = vsel %vm453_vm6, %v790_v47, %v788_v44 }
 0x1ac   : > { %v1307_v19 = vpop.eup %992  ;;  %v669_v59 = vadd.f32 %v1305_v58, %v667_v55  ;;  %v753_v55 = vsel %vm388_vm4, %v750_v32, %v752_v16 }
 0x1ad   : > { %v1310_v42 = vpop.eup %994  ;;  %v670_v43 = vadd.f32 %v1307_v19, %v668_v45  ;;  %v754_v45 = vsel %vm388_vm4, %v752_v16, %v750_v32  ;;  %v812_v27 = vpop.permute.xlu1 %811 }
 0x1ae   : > { %v1313_v5 = vpop.eup %996  ;;  %v671_v21 = vadd.f32 %v1310_v42, %v669_v59  ;;  %v810_v59 = vpop.permute.xlu0 %809 }
 0x1af   : > { %v1316_v56 = vpop.eup %998  ;;  %v672_v10 = vadd.f32 %v1313_v5, %v670_v43  ;;  %v1359_v43 = vsel %vm453_vm6, %v788_v44, %v790_v47  ;;  %v1367_v53 = vsel %vm489_vm7, %v810_v59, %v812_v27  ;;  %v1371_v60 = vsel %vm489_vm7, %v812_v27, %v810_v59 }
 0x1b0   : > { %v1319_v62 = vpop.eup %1000  ;;  %v673_v7 = vadd.f32 %v1316_v56, %v671_v21 }
 0x1b1   : > { %v1322_v36 = vpop.eup %1002  ;;  %v674_v52 = vadd.f32 %v1319_v62, %v672_v10 }
 0x1b2   : > { %v1325_v13 = vpop.eup %1004  ;;  %v675_v57 = vadd.f32 %v1322_v36, %v673_v7 }
 0x1b3   : > { %v1328_v22 = vpop.eup %1006  ;;  %v676_v15 = vadd.f32 %v1325_v13, %v674_v52 }
 0x1b4   : > { %v1331_v33 = vpop.eup %1008  ;;  %v677_v34 = vadd.f32 %v1328_v22, %v675_v57 }
 0x1b5   : > { %v678_v26 = vadd.f32 %v1331_v33, %v676_v15 }
 0x1b6   : > { %1010 = vrcp.f32 %v677_v34 }
 0x1b7   : > { %1012 = vrcp.f32 %v678_v26 }
 0x1c0   : > { %v1355_v9 = vpop.eup %1010 }
 0x1c1   : > { %v1373_v4 = vpop.eup %1012  ;;  %v681_v21 = vmul.f32 %v1355_v9, %v1293_v46  ;;  %v701_v10 = vmul.f32 %v1355_v9, %v1297_v17  ;;  %v723_v7 = vmul.f32 %v1355_v9, %v983_v39  ;;  %v745_v52 = vmul.f32 %v1355_v9, %v987_v30 }
 0x1c2   : > { %v682_v57 = vmul.f32 %v1373_v4, %v1295_v50  ;;  %v702_v15 = vmul.f32 %v1373_v4, %v1299_v20  ;;  %v724_v32 = vmul.f32 %v1373_v4, %v985_v54  ;;  %v746_v16 = vmul.f32 %v1373_v4, %v989_v51 }
 0x1c3   : > { %v683_v34 = vmul.f32 %v681_v21, %v1171_v11  ;;  %v703_v46 = vmul.f32 %v701_v10, %v1137_v48  ;;  %v725_v17 = vmul.f32 %v723_v7, %v1161_v1  ;;  %v747_v39 = vmul.f32 %v745_v52, %v1187_v25 }
 0x1c4   : > { %v684_v30 = vmul.f32 %v682_v57, %v1184_v24  ;;  %v704_v26 = vmul.f32 %v702_v15, %v1140_v49  ;;  %v726_v50 = vmul.f32 %v724_v32, %v1174_v14  ;;  %v748_v20 = vmul.f32 %v746_v16, %v1198_v37 }
 0x1c5   : > { %v694_v54 = vrot.slane %v683_v34, %v1107_v29  ;;  %v714_v51 = vrot.slane %v703_v46, %v1107_v29  ;;  %v736_v11 = vrot.slane %v725_v17, %v1107_v29  ;;  %v758_v48 = vrot.slane %v747_v39, %v1107_v29  ;;  %v832_v17 = vpop.permute.xlu0 %831  ;;  %v834_v39 = vpop.permute.xlu1 %833 }
 0x1c6   : > { %v698_v1 = vrot.slane %v684_v30, %v1107_v29  ;;  %v718_v25 = vrot.slane %v704_v26, %v1107_v29  ;;  %v740_v24 = vrot.slane %v726_v50, %v1107_v29  ;;  %v762_v49 = vrot.slane %v748_v20, %v1107_v29  ;;  %v1482_v50 = vld [vmem:[#allocation2_spill] sm:$0xff]  ;;  %v1483_v20 = vld [vmem:[#allocation3_spill] sm:$0xff] }
 0x1c7   : > { %v699_v44 = vmul.f32 %v694_v54, %v690_v38  ;;  %v719_v14 = vmul.f32 %v714_v51, %v710_v8  ;;  %v741_v47 = vmul.f32 %v736_v11, %v732_v12  ;;  %v763_v37 = vmul.f32 %v758_v48, %v754_v45 }
 0x1c8   : > { %v700_v59 = vmul.f32 %v698_v1, %v689_v18  ;;  %v720_v27 = vmul.f32 %v718_v25, %v709_v61  ;;  %v742_v21 = vmul.f32 %v740_v24, %v731_v28  ;;  %v764_v10 = vmul.f32 %v762_v49, %v753_v55  ;;  %v1480_v28 = vld [vmem:[#allocation5_spill] sm:$0xff] }
 0x1c9   : > { %v721_v7 = vadd.f32 %v719_v14, %v699_v44  ;;  %v767_v52 = vmul.f32 %v1355_v9, %v1305_v58  ;;  %v768_v57 = vmul.f32 %v1373_v4, %v1307_v19  ;;  %v783_v15 = vmul.f32 %v1355_v9, %v1310_v42  ;;  %v1481_v58 = vld [vmem:[#allocation6_spill] sm:$0xff] }
 0x1ca   : > { %v722_v32 = vadd.f32 %v720_v27, %v700_v59  ;;  %v784_v38 = vmul.f32 %v1373_v4, %v1313_v5  ;;  %v805_v18 = vmul.f32 %v1355_v9, %v1316_v56  ;;  %v806_v61 = vmul.f32 %v1373_v4, %v1319_v62 }
 0x1cb   : > { %v743_v8 = vadd.f32 %v741_v47, %v721_v7  ;;  %v769_v12 = vmul.f32 %v767_v52, %v1480_v28  ;;  %v770_v55 = vmul.f32 %v768_v57, %v1481_v58  ;;  %v785_v19 = vmul.f32 %v783_v15, %v1205_v40  ;;  %v854_v47 = vpop.permute.xlu0 %853 }
 0x1cc   : > { %v744_v45 = vadd.f32 %v742_v21, %v722_v32  ;;  %v786_v42 = vmul.f32 %v784_v38, %v1208_v41  ;;  %v807_v16 = vmul.f32 %v805_v18, %v1222_v63  ;;  %v808_v5 = vmul.f32 %v806_v61, %v1225_v0 }
 0x1cd   : > { %v765_v34 = vadd.f32 %v763_v37, %v743_v8  ;;  %v774_v56 = vrot.slane %v769_v12, %v1107_v29  ;;  %v778_v46 = vrot.slane %v770_v55, %v1107_v29  ;;  %v796_v62 = vrot.slane %v785_v19, %v1107_v29  ;;  %v856_v37 = vpop.permute.xlu1 %855 }
 0x1ce   : > { %v766_v30 = vadd.f32 %v764_v10, %v744_v45  ;;  %v800_v26 = vrot.slane %v786_v42, %v1107_v29  ;;  %v818_v40 = vrot.slane %v807_v16, %v1107_v29  ;;  %v822_v41 = vrot.slane %v808_v5, %v1107_v29 }
 0x1cf   : > { %v779_v63 = vmul.f32 %v774_v56, %v1482_v50  ;;  %v780_v0 = vmul.f32 %v778_v46, %v1483_v20  ;;  %v801_v54 = vmul.f32 %v796_v62, %v1359_v43  ;;  %v827_v51 = vmul.f32 %v1355_v9, %v1322_v36 }
 0x1d0   : > { %v802_v11 = vmul.f32 %v800_v26, %v1363_v31  ;;  %v823_v48 = vmul.f32 %v818_v40, %v1367_v53  ;;  %v824_v1 = vmul.f32 %v822_v41, %v1371_v60  ;;  %v828_v25 = vmul.f32 %v1373_v4, %v1325_v13 }
 0x1d1   : > { %v781_v24 = vadd.f32 %v779_v63, %v765_v34  ;;  %v782_v49 = vadd.f32 %v780_v0, %v766_v30  ;;  %v829_v44 = vmul.f32 %v827_v51, %v1264_v2  ;;  %v849_v14 = vmul.f32 %v1355_v9, %v1328_v22 }
 0x1d2   : > { %v830_v43 = vmul.f32 %v828_v25, %v1267_v3  ;;  %v850_v36 = vmul.f32 %v1373_v4, %v1331_v33  ;;  %v835_v2 = vsel %vm525_vm8, %v832_v17, %v834_v39  ;;  %v836_v22 = vsel %vm525_vm8, %v834_v39, %v832_v17 }
 0x1d3   : > { %v803_v31 = vadd.f32 %v801_v54, %v781_v24  ;;  %v804_v53 = vadd.f32 %v802_v11, %v782_v49  ;;  %v840_v60 = vrot.slane %v829_v44, %v1107_v29  ;;  %v851_v13 = vmul.f32 %v849_v14, %v1270_v6 }
 0x1d4   : > { %v844_v9 = vrot.slane %v830_v43, %v1107_v29  ;;  %v852_v3 = vmul.f32 %v850_v36, %v1273_v23  ;;  %v857_v6 = vsel %vm561_vm9, %v854_v47, %v856_v37  ;;  %v858_v52 = vsel %vm561_vm9, %v856_v37, %v854_v47 }
 0x1d5   : > { %v825_v59 = vadd.f32 %v823_v48, %v803_v31  ;;  %v826_v33 = vadd.f32 %v824_v1, %v804_v53  ;;  %v845_v4 = vmul.f32 %v840_v60, %v835_v2  ;;  %v862_v27 = vrot.slane %v851_v13, %v1107_v29 }
 0x1d6   : > { %v846_v21 = vmul.f32 %v844_v9, %v836_v22  ;;  %v866_v10 = vrot.slane %v852_v3, %v1107_v29 }
 0x1d7   : > { %v847_v7 = vadd.f32 %v845_v4, %v825_v59  ;;  %v867_v57 = vmul.f32 %v862_v27, %v857_v6 }
 0x1d8   : > { %v848_v15 = vadd.f32 %v846_v21, %v826_v33  ;;  %v868_v23 = vmul.f32 %v866_v10, %v858_v52 }
 0x1d9   : > { %v869_v32 = vadd.f32 %v867_v57, %v847_v7 }
 0x1da   : > { %v870_v38 = vadd.f32 %v868_v23, %v848_v15 }
 0x1db   : > { %871 = vst [vmem:[%s170_s28] sm:$0xff] %v869_v32 }
 0x1dc   : > { %872 = vst [vmem:[%s170_s28 + $0x8] sm:$0xff] %v870_v38 }
 0x1dd PF: > { %s13_s12 = sadd.s32 1, %s1020_s12  }
 0x1de   : > { %p10_p4 = scmp.ge.s32.totalorder %s13_s12, 4  }
 0x1e0   :  { %12 = sbr.rel (!%p10_p4) target bundleno = 1 (0x1), region = 70 }

</bundles_post_ra>
